<compile_context>
chip_gen: v7x
topology: tpu7x:2x2x1
jax: 0.10.0
libtpu: 0.0.40
codegen_flags: <defaults>
</compile_context>

<pallas_src>
import functools

import jax
import jax.numpy as jnp
from jax.experimental import pallas as pl
from jax.experimental.pallas import tpu as pltpu


def _round_up(v, m):
    return ((v + m - 1) // m) * m


def _min_sublane(dtype):
    """Minimum sublane multiple for the dtype's packed layout."""
    bits = jnp.dtype(dtype).itemsize * 8
    return max(8, 256 // bits)  # 8 for f32, 16 for bf16, 32 for int8/fp8


def _target_block_bytes():
    """Generation-aware input-block size target."""
    try:
        kind = jax.devices()[0].device_kind.lower()
    except Exception:  # pragma: no cover - defensive
        kind = ""
    if "v7" in kind:
        # ~3.2 TB/s HBM per TC: bigger blocks to amortize the ~0.35us/step cost.
        return 8 * 1024 * 1024
    # v5e/v6e: 2 MiB is already near the measured roofline knee.
    return 2 * 1024 * 1024


def _choose_tiles(n_rows, hw, dtype, target_bytes):
    """Pick (row_tile, hw_tile): multiples of (min_sublane, 128)."""
    itemsize = jnp.dtype(dtype).itemsize
    sub = _min_sublane(dtype)
    hw_cap = 2048 if target_bytes >= 8 * 1024 * 1024 else 1024
    hw_tile = min(_round_up(hw, 128), hw_cap)
    rows_for_target = max(sub, (target_bytes // (hw_tile * itemsize)) // sub * sub)
    row_tile = int(min(_round_up(n_rows, sub), rows_for_target, 2048))
    return row_tile, hw_tile


def _concat_pool_kernel(x_ref, out_ref, acc_max, acc_sum, *,
                        hw, hw_tile, needs_mask, neg_ident, inv_hw):
    # x_ref   : (row_tile, hw_tile) block of the flattened (N*C, H*W) input
    # out_ref : (row_tile, 2) output block -- column 0 = max, column 1 = mean
    # acc_max : (row_tile, 128) running max scratch (input dtype)
    # acc_sum : (row_tile, 128) running sum scratch (float32)
    k = pl.program_id(1)
    nk = pl.num_programs(1)

    @pl.when(k == 0)
    def _init():
        acc_max[...] = jnp.full(acc_max.shape, neg_ident, acc_max.dtype)
        acc_sum[...] = jnp.zeros(acc_sum.shape, acc_sum.dtype)

    n_chunks = hw_tile // 128

    def fold(masked):
        # Mask strip built once per (static) instantiation, broadcast per chunk.
        if masked:
            col = jax.lax.broadcasted_iota(jnp.int32, (1, 128), 1)

        def load(j):
            lo = j * 128
            c = x_ref[:, lo:lo + 128]
            if masked:
                valid = (k * hw_tile + lo + col) < hw
                cm = jnp.where(valid, c, jnp.array(neg_ident, c.dtype))
                cs = jnp.where(valid, c.astype(jnp.float32), jnp.float32(0.0))
            else:
                cm = c
                cs = c.astype(jnp.float32)
            return cm, cs

        # Local (vreg-level) fold over the 128-lane chunks.  Two interleaved
        # partials form a short pairwise tree without blowing register
        # pressure; the VMEM accumulators are NOT touched inside this loop.
        part_m = [None, None]
        part_s = [None, None]
        for j in range(n_chunks):
            cm, cs = load(j)
            b = j & 1
            part_m[b] = cm if part_m[b] is None else jnp.maximum(part_m[b], cm)
            part_s[b] = cs if part_s[b] is None else part_s[b] + cs
        if n_chunks > 1:
            local_m = jnp.maximum(part_m[0], part_m[1])
            local_s = part_s[0] + part_s[1]
        else:
            local_m, local_s = part_m[0], part_s[0]

        # Single read-modify-write of each accumulator slab per grid step.
        acc_max[...] = jnp.maximum(acc_max[...], local_m)
        acc_sum[...] = acc_sum[...] + local_s

    if needs_mask:
        # Only the final HW tile can be partial: steady state stays unmasked.
        @pl.when(k < nk - 1)
        def _steady():
            fold(masked=False)

        @pl.when(k == nk - 1)
        def _tail():
            fold(masked=True)
    else:
        fold(masked=False)

    @pl.when(k == nk - 1)
    def _finalize():
        # One cross-lane (XLU) reduce of each (row_tile, 128) slab, then a
        # single (row_tile, 2) output block -> one writeback DMA per row block.
        row_max = jnp.max(acc_max[...], axis=-1, keepdims=True)
        row_sum = jnp.sum(acc_sum[...], axis=-1, keepdims=True)
        out_ref[:, 0:1] = row_max.astype(out_ref.dtype)
        out_ref[:, 1:2] = (row_sum * inv_hw).astype(out_ref.dtype)


def adaptive_concat_pool2d(x, *, xla_fallback_bytes=1 << 20):
    """x: (N, C, H, W) -> (N, 2*C, 1, 1) = [max | mean] over (H, W).

    xla_fallback_bytes: inputs smaller than this skip the Pallas dispatch and
    let XLA fuse the tiny reduction into its neighbors (production default
    ~1 MiB; pass 0 to force the Pallas kernel, as the self-test does).
    """
    N, C, H, W = x.shape
    hw = H * W
    n_rows = N * C
    itemsize = jnp.dtype(x.dtype).itemsize

    if n_rows * hw * itemsize < xla_fallback_bytes:
        mx = jnp.max(x, axis=(2, 3), keepdims=True)
        av = jnp.mean(x, axis=(2, 3), keepdims=True).astype(x.dtype)
        return jnp.concatenate([mx, av], axis=1)

    x_flat = x.reshape(n_rows, hw)  # pure view of NCHW

    row_tile, hw_tile = _choose_tiles(n_rows, hw, x.dtype, _target_block_bytes())
    grid = (pl.cdiv(n_rows, row_tile), pl.cdiv(hw, hw_tile))
    needs_mask = (hw % hw_tile) != 0

    if jnp.issubdtype(x.dtype, jnp.floating):
        neg_ident = float("-inf")
    else:
        neg_ident = int(jnp.iinfo(x.dtype).min)

    kernel = functools.partial(
        _concat_pool_kernel,
        hw=hw,
        hw_tile=hw_tile,
        needs_mask=needs_mask,
        neg_ident=neg_ident,
        inv_hw=1.0 / hw,
    )

    out = pl.pallas_call(
        kernel,
        out_shape=jax.ShapeDtypeStruct((n_rows, 2), x.dtype),  # [max | mean]
        grid_spec=pltpu.PrefetchScalarGridSpec(
            num_scalar_prefetch=0,
            grid=grid,
            in_specs=[
                pl.BlockSpec((row_tile, hw_tile), lambda i, k: (i, k)),
            ],
            out_specs=pl.BlockSpec((row_tile, 2), lambda i, k: (i, 0)),
            scratch_shapes=[
                pltpu.VMEM((row_tile, 128), x.dtype),      # running max
                pltpu.VMEM((row_tile, 128), jnp.float32),  # running sum (f32)
            ],
        ),
        compiler_params=pltpu.CompilerParams(
            dimension_semantics=("parallel", "arbitrary"),
            vmem_limit_bytes=32 * 1024 * 1024,
        ),
        cost_estimate=pl.CostEstimate(
            flops=2 * n_rows * hw,
            transcendentals=0,
            bytes_accessed=n_rows * hw * itemsize + 2 * n_rows * itemsize,
        ),
    )(x_flat)

    mx = out[:, 0].reshape(N, C, 1, 1)
    mean = out[:, 1].reshape(N, C, 1, 1)
    # Channel concat in the wrapper (free for XLA; avoids in-kernel relayout).
    return jnp.concatenate([mx, mean], axis=1)


def _reference(x):
    mx = jnp.max(x, axis=(2, 3), keepdims=True)
    av = jnp.mean(x, axis=(2, 3), keepdims=True)
    return jnp.concatenate([mx, av], axis=1)


if __name__ == "__main__":
    key = jax.random.PRNGKey(0)

    # Small shapes consistent with an NCHW conv feature map. The extra shapes
    # exercise the multi-step HW reduction, the masked last tile
    # (HW % hw_tile != 0) and ragged row counts (N*C not a sublane multiple).
    shapes = [
        (2, 4, 16, 16),   # primary test shape: single-tile grid
        (2, 8, 48, 48),   # HW=2304 -> several HW tiles + partial last tile
        (2, 37, 13, 11),  # ragged: R=74 (not /8), HW=143 (not /128)
    ]

    for idx, shape in enumerate(shapes):
        k = jax.random.fold_in(key, idx)
        x = jax.random.normal(k, shape, dtype=jnp.float32)

        # xla_fallback_bytes=0 forces the Pallas kernel for the self-test.
        out = jax.block_until_ready(
            adaptive_concat_pool2d(x, xla_fallback_bytes=0))
        ref = _reference(x)

        N, C, H, W = shape
        assert out.shape == (N, 2 * C, 1, 1), (shape, out.shape)
        assert jnp.allclose(out, ref, atol=1e-5, rtol=1e-5), (
            f"mismatch vs reference for shape {shape}")

    print("KERNEL_OK")
</pallas_src>

<mosaic_0001>
module attributes {stable_mosaic.version = 11 : i64} {
  func.func @_concat_pool_kernel(%arg0: i32, %arg1: i32, %arg2: memref<8x256xf32, #tpu.memory_space<vmem>>, %arg3: memref<8x2xf32, #tpu.memory_space<vmem>>, %arg4: memref<8x128xf32, #tpu.memory_space<vmem>>, %arg5: memref<8x128xf32, #tpu.memory_space<vmem>>) attributes {dimension_semantics = [#tpu.dimension_semantics<parallel>, #tpu.dimension_semantics<arbitrary>], iteration_bounds = array<i64: 1, 1>, scalar_prefetch = 0 : i64, scratch_operands = 2 : i64, tpu.core_type = #tpu.core_type<tc>, window_params = [{transform_indices = @transform_0, window_bounds = array<i64: 8, 256>}, {transform_indices = @transform_1, window_bounds = array<i64: 8, 2>}]} {
    %c0_i32 = arith.constant 0 : i32
    %0 = arith.cmpi eq, %arg1, %c0_i32 : i32
    %1 = arith.extui %0 : i1 to i32
    %c0_i32_0 = arith.constant 0 : i32
    %2 = arith.cmpi ne, %1, %c0_i32_0 : i32
    scf.if %2 {
      %cst = arith.constant 0xFF800000 : f32
      %16 = vector.broadcast %cst : f32 to vector<8x128xf32>
      %c0_13 = arith.constant 0 : index
      %c0_14 = arith.constant 0 : index
      %17 = vector.load %arg4[%c0_13, %c0_14] : memref<8x128xf32, #tpu.memory_space<vmem>>, vector<8x128xf32>
      tpu.vector_store %arg4[%c0_13, %c0_14], %16 {strides = array<i32>} : memref<8x128xf32, #tpu.memory_space<vmem>>, vector<8x128xf32>,
      %cst_15 = arith.constant 0.000000e+00 : f32
      %18 = vector.broadcast %cst_15 : f32 to vector<8x128xf32>
      %c0_16 = arith.constant 0 : index
      %c0_17 = arith.constant 0 : index
      %19 = vector.load %arg5[%c0_16, %c0_17] : memref<8x128xf32, #tpu.memory_space<vmem>>, vector<8x128xf32>
      tpu.vector_store %arg5[%c0_16, %c0_17], %18 {strides = array<i32>} : memref<8x128xf32, #tpu.memory_space<vmem>>, vector<8x128xf32>,
    } else {
    }
    %c0 = arith.constant 0 : index
    %c0_1 = arith.constant 0 : index
    %3 = vector.load %arg2[%c0, %c0_1] : memref<8x256xf32, #tpu.memory_space<vmem>>, vector<8x128xf32>
    %c0_2 = arith.constant 0 : index
    %c128 = arith.constant 128 : index
    %4 = vector.load %arg2[%c0_2, %c128] : memref<8x256xf32, #tpu.memory_space<vmem>>, vector<8x128xf32>
    %5 = arith.maximumf %3, %4 : vector<8x128xf32>
    %6 = arith.addf %3, %4 : vector<8x128xf32>
    %c0_3 = arith.constant 0 : index
    %c0_4 = arith.constant 0 : index
    %7 = vector.load %arg4[%c0_3, %c0_4] : memref<8x128xf32, #tpu.memory_space<vmem>>, vector<8x128xf32>
    %8 = arith.maximumf %7, %5 : vector<8x128xf32>
    %c0_5 = arith.constant 0 : index
    %c0_6 = arith.constant 0 : index
    %9 = vector.load %arg4[%c0_5, %c0_6] : memref<8x128xf32, #tpu.memory_space<vmem>>, vector<8x128xf32>
    tpu.vector_store %arg4[%c0_5, %c0_6], %8 {strides = array<i32>} : memref<8x128xf32, #tpu.memory_space<vmem>>, vector<8x128xf32>,
    %c0_7 = arith.constant 0 : index
    %c0_8 = arith.constant 0 : index
    %10 = vector.load %arg5[%c0_7, %c0_8] : memref<8x128xf32, #tpu.memory_space<vmem>>, vector<8x128xf32>
    %11 = arith.addf %10, %6 : vector<8x128xf32>
    %c0_9 = arith.constant 0 : index
    %c0_10 = arith.constant 0 : index
    %12 = vector.load %arg5[%c0_9, %c0_10] : memref<8x128xf32, #tpu.memory_space<vmem>>, vector<8x128xf32>
    tpu.vector_store %arg5[%c0_9, %c0_10], %11 {strides = array<i32>} : memref<8x128xf32, #tpu.memory_space<vmem>>, vector<8x128xf32>,
    %c0_i32_11 = arith.constant 0 : i32
    %13 = arith.cmpi eq, %arg1, %c0_i32_11 : i32
    %14 = arith.extui %13 : i1 to i32
    %c0_i32_12 = arith.constant 0 : i32
    %15 = arith.cmpi ne, %14, %c0_i32_12 : i32
    scf.if %15 {
      %c0_13 = arith.constant 0 : index
      %c0_14 = arith.constant 0 : index
      %16 = vector.load %arg4[%c0_13, %c0_14] : memref<8x128xf32, #tpu.memory_space<vmem>>, vector<8x128xf32>
      %cst = arith.constant dense<0xFF800000> : vector<8xf32>
      %17 = vector.multi_reduction <maximumf>, %16, %cst [1] : vector<8x128xf32> to vector<8xf32>
      %18 = vector.shape_cast %17 : vector<8xf32> to vector<8x1xf32>
      %c0_15 = arith.constant 0 : index
      %c0_16 = arith.constant 0 : index
      %19 = vector.load %arg5[%c0_15, %c0_16] : memref<8x128xf32, #tpu.memory_space<vmem>>, vector<8x128xf32>
      %cst_17 = arith.constant dense<0.000000e+00> : vector<8xf32>
      %20 = vector.multi_reduction <add>, %19, %cst_17 [1] : vector<8x128xf32> to vector<8xf32>
      %21 = vector.shape_cast %20 : vector<8xf32> to vector<8x1xf32>
      %c0_18 = arith.constant 0 : index
      %c0_19 = arith.constant 0 : index
      %22 = vector.load %arg3[%c0_18, %c0_19] : memref<8x2xf32, #tpu.memory_space<vmem>>, vector<8x1xf32>
      tpu.vector_store %arg3[%c0_18, %c0_19], %18 {strides = array<i32>} : memref<8x2xf32, #tpu.memory_space<vmem>>, vector<8x1xf32>,
      %cst_20 = arith.constant 3.906250e-03 : f32
      %23 = vector.broadcast %cst_20 : f32 to vector<8x1xf32>
      %24 = arith.mulf %21, %23 : vector<8x1xf32>
      %c0_21 = arith.constant 0 : index
      %c1 = arith.constant 1 : index
      %25 = vector.load %arg3[%c0_21, %c1] : memref<8x2xf32, #tpu.memory_space<vmem>>, vector<8x1xf32>
      tpu.vector_store %arg3[%c0_21, %c1], %24 {strides = array<i32>} : memref<8x2xf32, #tpu.memory_space<vmem>>, vector<8x1xf32>,
    } else {
    }
    return
  }
  func.func @transform_0(%arg0: i32, %arg1: i32) -> (i32, i32) {
    %c0_i32 = arith.constant 0 : i32
    return %arg0, %arg1 : i32, i32
  }
  func.func @transform_1(%arg0: i32, %arg1: i32) -> (i32, i32) {
    %c0_i32 = arith.constant 0 : i32
    %c0_i32_0 = arith.constant 0 : i32
    return %arg0, %c0_i32 : i32, i32
  }
}

</mosaic_0001>

<bundles_post_ra>
// kernel: tpu_custom_call.1
= control target key start
LH: loop header
LB: loop body
LE: loop exit
PB: predicated region body
PF: predicated region fallthrough
CT: control target
= control target key end

     0   :  { %6 = vsyncpa [#allocation5], 0  ;;  %s80_s6 = smov [#allocation4]   ;;  %s109_s0 = inlined_call_operand.hbm [shape: f32[8,256], index: 0, kind: input, shape index: {}]   ;;  %s110_s1 = inlined_call_operand.vmem [shape: f32[8,2], index: 1, kind: output, shape index: {}]  }
   0x1   :  { %s13_s7 = sshll.u32 %s80_s6, 4  ;;  %s56_s10 = scalar_lea.hbm %s109_s0, 256  ;;  %s14_s7 = int_to_ptr.vmem [resolvable:$true] %s13_s7 }
   0x2   :  { %p57_p0 = scmp.ne.s32.totalorder %s109_s0, %s56_s10  ;;  %p60_p1 = scmp.lt.u32.totalorder %s56_s10, %s109_s0 }
   0x4   :  { %p62_p2 = pnand %p60_p1, %p57_p0 }
   0x6   :  { %65 = shalt.err (!%p62_p2)
}
   0x7   :  { %s66_s15 = scalar_lea.vmem %s14_s7, 256  ;;  %p71_p4 = scmp.lt.s32.totalorder %s14_s7, %s14_s7 }
   0x8   :  { %p67_p3 = scmp.ne.s32.totalorder %s14_s7, %s66_s15  ;;  %p72_p5 = scmp.lt.s32.totalorder %s66_s15, %s66_s15 }
   0xa   :  { %p73_p6 = por %p72_p5, %p71_p4 }
   0xc   :  { %p74_p7 = pnand %p73_p6, %p67_p3 }
   0xe   :  { %77 = shalt.err (!%p74_p7)
}
   0xf   :  { %16 = dma.hbm_to_vmem [thread:$0]  %s109_s0, 256, %s14_s7, [#allocation5]  }
  0x10   :  { %78 = dma.done.wait [#allocation5], 256  }
  0x11   :  { %79 = vsyncadd [#allocation5], 4294967040  ;;  %v26_v0 = vld [vmem:[#allocation4] sm:$0xff]  ;;  %v27_v1 = vld [vmem:[#allocation4 + $0x8] sm:$0xff]  ;;  %vm45_vm0 = vcmask 7168   ;;  %vm48_vm1 = vcmask 15368  }
  0x12   :  { %v29_v2 = vadd.f32 %v27_v1, %v26_v0  ;;  %v28_v3 = vmax.f32 %v26_v0, %v27_v1 }
  0x14   :  { %43 = vadd.xlane.f32.xlu0 %v29_v2 }
  0x18   :  { %40 = vmax.xlane.f32.xlu0 %v28_v3 }
  0xa1   :  { %v44_v4 = vpop.xlane.xlu0 %43 }
  0xa2   :  { %v47_v5 = vmul.f32 0.00390625, %v44_v4 }
  0xa5   :  { %v41_v6 = vpop.xlane.xlu0 %40 }
  0xa6   :  { %46 = vst.msk [vmem:[%s110_s1] sm:$0xff] %vm45_vm0, %v41_v6 }
  0xa7   :  { %49 = vst.msk [vmem:[%s110_s1] sm:$0xff] %vm48_vm1, %v47_v5 }
  0xa8   :  { %54 = vsyncpa [#allocation5], 1 }

</bundles_post_ra>
